<compile_context>
chip_gen: v6e
topology: v6e:2x2x1
jax: 0.10.0
libtpu: 0.0.40
codegen_flags: <defaults>
</compile_context>

<pallas_src>
import functools

import jax
import jax.numpy as jnp
from jax import lax
from jax.experimental import pallas as pl
from jax.experimental.pallas import tpu as pltpu


# Rows per in-kernel sub-block: (256, 128) f32 hidden activation = 128 KiB,
# comfortably inside the 64-vreg (256 KiB) register file.
_SUB_ROWS = 256


def _round_up(n: int, m: int) -> int:
    return ((n + m - 1) // m) * m


def gating_kernel(x_ref, wh_t_ref, bh_ref, wo_t_ref, bo_ref, out_ref,
                  *, sub_rows, n_sub):
    # Weights/biases are tiny and grid-resident: load once per grid step.
    wh = wh_t_ref[...]                       # (K, Hp)  compute dtype
    bh = bh_ref[...]                         # (1, Hp)  f32
    wo = wo_t_ref[...]                       # (Hp, G)  compute dtype
    bo = bo_ref[...]                         # (1, G)   f32
    cdt = wh.dtype

    def process(r0):
        # x stays f32 in HBM; cast on the VPU (which has slack) instead of
        # paying an extra HBM pass in the wrapper.
        xb = x_ref[pl.ds(r0, sub_rows), :].astype(cdt)
        h = jnp.dot(xb, wh, preferred_element_type=jnp.float32)   # MXU, f32 acc
        h = jnp.maximum(h + bh, 0.0).astype(cdt)                  # f32 epilogue
        z = jnp.dot(h, wo, preferred_element_type=jnp.float32) + bo
        out_ref[pl.ds(r0, sub_rows), :] = jax.nn.sigmoid(z).astype(out_ref.dtype)

    if n_sub == 1:
        process(0)
    else:
        def body(s, carry):
            process(pl.multiple_of(s * sub_rows, sub_rows))
            return carry
        lax.fori_loop(0, n_sub, body, 0, unroll=True)


def prepare_gating_params(hidden_weight, hidden_bias, output_weight, output_bias,
                          *, compute_dtype=jnp.bfloat16):
    """One-time (outside the jit'd forward) transpose / pad / cast.

    hidden_weight: (H, K), hidden_bias: (H,), output_weight: (G, H),
    output_bias: (G,). Returns kernel-ready operands:
      wh_t: (K, Hp) compute_dtype, bh: (1, Hp) f32,
      wo_t: (Hp, G) compute_dtype, bo: (1, G) f32,
    with Hp = round_up(H, 128). Zero padding is exact (relu(0)=0 and zero
    Wo rows contribute nothing).
    """
    H, K = hidden_weight.shape
    G = output_weight.shape[0]
    Hp = _round_up(H, 128)

    wh_t = jnp.zeros((K, Hp), compute_dtype).at[:, :H].set(
        hidden_weight.T.astype(compute_dtype))
    bh = jnp.zeros((1, Hp), jnp.float32).at[:, :H].set(
        hidden_bias.astype(jnp.float32).reshape(1, H))
    wo_t = jnp.zeros((Hp, G), compute_dtype).at[:H, :].set(
        output_weight.T.astype(compute_dtype))
    bo = output_bias.astype(jnp.float32).reshape(1, G)
    return wh_t, bh, wo_t, bo


def _choose_batch_tile(B: int, max_batch_tile: int) -> int:
    if B <= 8:
        return B                      # block dim == full array dim (allowed as-is)
    # Aim for >= 2 grid steps (v7x megacore sharding), rows a multiple of 8.
    tile = _round_up(-(-B // 2), 8)
    tile = min(tile, max_batch_tile)
    if tile > _SUB_ROWS:              # large tile: multiple of the inner sub-block
        tile = _round_up(tile, _SUB_ROWS)
    return tile


def gating_network_forward(x, wh_t, bh, wo_t, bo, *,
                           max_batch_tile=1024, out_dtype=jnp.float32):
    """x: (B, K) float; (wh_t, bh, wo_t, bo) from prepare_gating_params.

    max_batch_tile should be a multiple of 256 (default 1024).
    """
    B, K = x.shape
    Kp, Hp = wh_t.shape
    assert K == Kp, "input feature size mismatch"
    G = wo_t.shape[1]

    batch_tile = _choose_batch_tile(B, max_batch_tile)
    grid = pl.cdiv(B, batch_tile)
    if batch_tile <= _SUB_ROWS:
        sub_rows, n_sub = batch_tile, 1
    else:
        sub_rows, n_sub = _SUB_ROWS, batch_tile // _SUB_ROWS

    w_bytes = jnp.dtype(wh_t.dtype).itemsize
    x_bytes = jnp.dtype(x.dtype).itemsize
    o_bytes = jnp.dtype(out_dtype).itemsize
    cost = pl.CostEstimate(
        flops=2 * B * (K * Hp + Hp * G),
        transcendentals=B * G,                              # sigmoid
        bytes_accessed=(B * K * x_bytes                     # x (native dtype)
                        + K * Hp * w_bytes + Hp * 4         # Wh^T, bh
                        + Hp * G * w_bytes + G * 4          # Wo^T, bo
                        + B * G * o_bytes),                 # gates out
    )

    kernel = functools.partial(gating_kernel, sub_rows=sub_rows, n_sub=n_sub)

    return pl.pallas_call(
        kernel,
        out_shape=jax.ShapeDtypeStruct((B, G), out_dtype),
        grid_spec=pl.GridSpec(
            grid=(grid,),
            in_specs=[
                pl.BlockSpec((batch_tile, K), lambda i: (i, 0)),   # x tile
                pl.BlockSpec((K, Hp), lambda i: (0, 0)),           # Wh^T (resident)
                pl.BlockSpec((1, Hp), lambda i: (0, 0)),           # bh
                pl.BlockSpec((Hp, G), lambda i: (0, 0)),           # Wo^T (resident)
                pl.BlockSpec((1, G), lambda i: (0, 0)),            # bo
            ],
            out_specs=pl.BlockSpec((batch_tile, G), lambda i: (i, 0)),
        ),
        compiler_params=pltpu.CompilerParams(
            dimension_semantics=("parallel",),   # megacore-shard the batch grid
        ),
        cost_estimate=cost,
    )(x, wh_t, bh, wo_t, bo)


if __name__ == "__main__":
    # Module hyperparameters (small, consistent with the forward pass).
    input_size = 32
    n_neurons = 4
    n_branches = 4
    branch_size = 8          # unused in forward; kept for module fidelity
    hidden_size = 64
    n_gates = n_neurons * n_branches   # 16
    batch = 8

    key = jax.random.PRNGKey(0)
    kx, kw1, kb1, kw2, kb2, kx2 = jax.random.split(key, 6)

    x = jax.random.normal(kx, (batch, input_size), dtype=jnp.float32)

    # Deterministic "hypernetwork-generated" weights (buffers in the module).
    hidden_weight = 0.1 * jax.random.normal(kw1, (hidden_size, input_size), jnp.float32)
    hidden_bias = 0.1 * jax.random.normal(kb1, (hidden_size,), jnp.float32)
    output_weight = 0.1 * jax.random.normal(kw2, (n_gates, hidden_size), jnp.float32)
    output_bias = 0.1 * jax.random.normal(kb2, (n_gates,), jnp.float32)

    def ref_forward(xx):
        hidden_ref = jnp.maximum(xx @ hidden_weight.T + hidden_bias, 0.0)
        return jax.nn.sigmoid(hidden_ref @ output_weight.T + output_bias)

    fwd = jax.jit(gating_network_forward)

    # 1) f32 compute path: tight correctness check.
    p_f32 = prepare_gating_params(hidden_weight, hidden_bias,
                                  output_weight, output_bias,
                                  compute_dtype=jnp.float32)
    gates_f32 = jax.block_until_ready(fwd(x, *p_f32))
    assert gates_f32.shape == (batch, n_gates)
    assert jnp.allclose(gates_f32, ref_forward(x), atol=1e-5, rtol=1e-5)

    # 2) bf16 fast path (bandwidth/MXU win on v6e/v7x): looser tolerance.
    p_bf16 = prepare_gating_params(hidden_weight, hidden_bias,
                                   output_weight, output_bias,
                                   compute_dtype=jnp.bfloat16)
    gates_bf16 = jax.block_until_ready(fwd(x, *p_bf16))
    assert gates_bf16.shape == (batch, n_gates)
    assert jnp.allclose(gates_bf16, ref_forward(x), atol=2e-2, rtol=2e-2)

    # 3) Ragged batch: exercises the cdiv grid + masked partial tail block
    #    (no wrapper-side padding or output slicing).
    batch2 = 20
    x2 = jax.random.normal(kx2, (batch2, input_size), dtype=jnp.float32)
    gates2 = jax.block_until_ready(fwd(x2, *p_bf16))
    assert gates2.shape == (batch2, n_gates)
    assert jnp.allclose(gates2, ref_forward(x2), atol=2e-2, rtol=2e-2)

    print("KERNEL_OK")
</pallas_src>

<mosaic_0001>
module attributes {stable_mosaic.version = 11 : i64} {
  func.func @gating_kernel(%arg0: i32, %arg1: memref<8x32xf32, #tpu.memory_space<vmem>>, %arg2: memref<32x128xf32, #tpu.memory_space<vmem>>, %arg3: memref<1x128xf32, #tpu.memory_space<vmem>>, %arg4: memref<128x16xf32, #tpu.memory_space<vmem>>, %arg5: memref<1x16xf32, #tpu.memory_space<vmem>>, %arg6: memref<8x16xf32, #tpu.memory_space<vmem>>) attributes {dimension_semantics = [#tpu.dimension_semantics<parallel>], iteration_bounds = array<i64: 1>, scalar_prefetch = 0 : i64, scratch_operands = 0 : i64, tpu.core_type = #tpu.core_type<tc>, window_params = [{transform_indices = @transform_0, window_bounds = array<i64: 8, 32>}, {pipeline_mode = #tpu.pipeline_mode<synchronous>, transform_indices = @transform_1, window_bounds = array<i64: 32, 128>}, {pipeline_mode = #tpu.pipeline_mode<synchronous>, transform_indices = @transform_2, window_bounds = array<i64: 1, 128>}, {pipeline_mode = #tpu.pipeline_mode<synchronous>, transform_indices = @transform_3, window_bounds = array<i64: 128, 16>}, {pipeline_mode = #tpu.pipeline_mode<synchronous>, transform_indices = @transform_4, window_bounds = array<i64: 1, 16>}, {transform_indices = @transform_5, window_bounds = array<i64: 8, 16>}]} {
    %c0 = arith.constant 0 : index
    %c0_0 = arith.constant 0 : index
    %0 = vector.load %arg2[%c0, %c0_0] : memref<32x128xf32, #tpu.memory_space<vmem>>, vector<32x128xf32>
    %c0_1 = arith.constant 0 : index
    %c0_2 = arith.constant 0 : index
    %1 = vector.load %arg3[%c0_1, %c0_2] : memref<1x128xf32, #tpu.memory_space<vmem>>, vector<1x128xf32>
    %c0_3 = arith.constant 0 : index
    %c0_4 = arith.constant 0 : index
    %2 = vector.load %arg4[%c0_3, %c0_4] : memref<128x16xf32, #tpu.memory_space<vmem>>, vector<128x16xf32>
    %c0_5 = arith.constant 0 : index
    %c0_6 = arith.constant 0 : index
    %3 = vector.load %arg5[%c0_5, %c0_6] : memref<1x16xf32, #tpu.memory_space<vmem>>, vector<1x16xf32>
    %c0_7 = arith.constant 0 : index
    %c0_8 = arith.constant 0 : index
    %4 = vector.load %arg1[%c0_7, %c0_8] : memref<8x32xf32, #tpu.memory_space<vmem>>, vector<8x32xf32>
    %cst = arith.constant dense<0.000000e+00> : vector<8x128xf32>
    %5 = tpu.matmul %4, %0, %cst {dimension_numbers = #tpu.dot_dimension_numbers<[1], [0], [0], [1], [0, 0, 1, 1], [], []>} : vector<8x32xf32>, vector<32x128xf32>, vector<8x128xf32> -> vector<8x128xf32>
    %6 = vector.broadcast %1 : vector<1x128xf32> to vector<8x128xf32>
    %7 = arith.addf %5, %6 : vector<8x128xf32>
    %cst_9 = arith.constant 0.000000e+00 : f32
    %8 = vector.broadcast %cst_9 : f32 to vector<8x128xf32>
    %9 = arith.maximumf %7, %8 : vector<8x128xf32>
    %cst_10 = arith.constant dense<0.000000e+00> : vector<8x16xf32>
    %10 = tpu.matmul %9, %2, %cst_10 {dimension_numbers = #tpu.dot_dimension_numbers<[1], [0], [0], [1], [0, 0, 1, 1], [], []>} : vector<8x128xf32>, vector<128x16xf32>, vector<8x16xf32> -> vector<8x16xf32>
    %11 = vector.broadcast %3 : vector<1x16xf32> to vector<8x16xf32>
    %12 = arith.addf %10, %11 : vector<8x16xf32>
    %13 = arith.negf %12 : vector<8x16xf32>
    %14 = math.exp %13 : vector<8x16xf32>
    %cst_11 = arith.constant 1.000000e+00 : f32
    %15 = vector.broadcast %cst_11 : f32 to vector<8x16xf32>
    %16 = arith.addf %15, %14 : vector<8x16xf32>
    %17 = arith.divf %15, %16 : vector<8x16xf32>
    %c0_12 = arith.constant 0 : index
    %c0_13 = arith.constant 0 : index
    %18 = vector.load %arg6[%c0_12, %c0_13] : memref<8x16xf32, #tpu.memory_space<vmem>>, vector<8x16xf32>
    tpu.vector_store %arg6[%c0_12, %c0_13], %17 {strides = array<i32>} : memref<8x16xf32, #tpu.memory_space<vmem>>, vector<8x16xf32>,
    return
  }
  func.func @transform_0(%arg0: i32) -> (i32, i32) {
    %c0_i32 = arith.constant 0 : i32
    %c0_i32_0 = arith.constant 0 : i32
    return %arg0, %c0_i32 : i32, i32
  }
  func.func @transform_1(%arg0: i32) -> (i32, i32) {
    %c0_i32 = arith.constant 0 : i32
    %c0_i32_0 = arith.constant 0 : i32
    %c0_i32_1 = arith.constant 0 : i32
    return %c0_i32, %c0_i32_0 : i32, i32
  }
  func.func @transform_2(%arg0: i32) -> (i32, i32) {
    %c0_i32 = arith.constant 0 : i32
    %c0_i32_0 = arith.constant 0 : i32
    %c0_i32_1 = arith.constant 0 : i32
    return %c0_i32, %c0_i32_0 : i32, i32
  }
  func.func @transform_3(%arg0: i32) -> (i32, i32) {
    %c0_i32 = arith.constant 0 : i32
    %c0_i32_0 = arith.constant 0 : i32
    %c0_i32_1 = arith.constant 0 : i32
    return %c0_i32, %c0_i32_0 : i32, i32
  }
  func.func @transform_4(%arg0: i32) -> (i32, i32) {
    %c0_i32 = arith.constant 0 : i32
    %c0_i32_0 = arith.constant 0 : i32
    %c0_i32_1 = arith.constant 0 : i32
    return %c0_i32, %c0_i32_0 : i32, i32
  }
  func.func @transform_5(%arg0: i32) -> (i32, i32) {
    %c0_i32 = arith.constant 0 : i32
    %c0_i32_0 = arith.constant 0 : i32
    return %arg0, %c0_i32 : i32, i32
  }
}

</mosaic_0001>

<bundles_post_ra>
// kernel: gating_network_forward.1
= control target key start
LH: loop header
LB: loop body
LE: loop exit
PB: predicated region body
PF: predicated region fallthrough
CT: control target
= control target key end

     0   :  { %v324_v1 = vmov 0.0   ;;  %vm325_vm0 = vmmov 0   ;;  %vm50_vm1 = vcmask 261120   ;;  %s453_s0 = inlined_call_operand.vmem [shape: f32[8,32], index: 0, kind: input, shape index: {}]   ;;  %s454_s1 = inlined_call_operand.vmem [shape: f32[32,128], index: 1, kind: input, shape index: {}]   ;;  %s455_s2 = inlined_call_operand.vmem [shape: f32[1,128], index: 2, kind: input, shape index: {}]   ;;  %s456_s3 = inlined_call_operand.vmem [shape: f32[128,16], index: 3, kind: input, shape index: {}]   ;;  %s457_s4 = inlined_call_operand.vmem [shape: f32[1,16], index: 4, kind: input, shape index: {}]   ;;  %s458_s5 = inlined_call_operand.hbm [shape: f32[8,16], index: 5, kind: output, shape index: {}]  }
   0x1   :  { %v24_v0 = vld [vmem:[%s454_s1 + $0x18] sm:$0xff]  ;;  %249 = vmatprep.subr.mxu0 %v324_v1  ;;  %v23_v2 = vld [vmem:[%s454_s1 + $0x10] sm:$0xff]  ;;  %257 = vmatprep.mubr.msk.f32.mxu0 %vm325_vm0, %v324_v1  ;;  %v22_v5 = vld [vmem:[%s454_s1 + $0x8] sm:$0xff] }
   0x2   :  { %v41_v3 = vld [vmem:[%s456_s3 + $0x78] sm:$0xff]  ;;  %250 = vmatpush3.msra.mxu0 %v24_v0  ;;  %260 = vmatprep.subr.mxu1 %v324_v1  ;;  %v40_v4 = vld [vmem:[%s456_s3 + $0x70] sm:$0xff]  ;;  %v39_v6 = vld [vmem:[%s456_s3 + $0x68] sm:$0xff] }
   0x3   :  { %251 = vmatprep.subr.mxu0 %v324_v1  ;;  %261 = vmatpush3.msra.mxu1 %v41_v3  ;;  %v21_v7 = vld [vmem:[%s454_s1] sm:$0xff] }
   0x4   :  { %252 = vmatpush3.msra.mxu0 %v23_v2  ;;  %262 = vmatprep.subr.mxu1 %v324_v1  ;;  %v43_v8 = vld [vmem:[%s453_s0] sm:$0xff] }
   0x5   :  { %253 = vmatprep.subr.mxu0 %v324_v1  ;;  %263 = vmatpush3.msra.mxu1 %v40_v4  ;;  %v38_v9 = vld [vmem:[%s456_s3 + $0x60] sm:$0xff] }
   0x6   :  { %254 = vmatpush3.msra.mxu0 %v22_v5  ;;  %264 = vmatprep.subr.mxu1 %v324_v1 }
   0x7   :  { %10 = vsyncpa [#allocation3], 0  ;;  %255 = vmatprep.subr.mxu0 %v324_v1  ;;  %265 = vmatpush3.msra.mxu1 %v39_v6  ;;  %v37_v10 = vld [vmem:[%s456_s3 + $0x58] sm:$0xff]  ;;  %v36_v11 = vld [vmem:[%s456_s3 + $0x50] sm:$0xff]  ;;  %vm207_vm2 = vcmask 130048  }
   0x8   :  { %256 = vmatpush3.msra.mxu0 %v21_v7  ;;  %266 = vmatprep.subr.mxu1 %v324_v1  ;;  %v35_v12 = vld [vmem:[%s456_s3 + $0x48] sm:$0xff]  ;;  %v34_v13 = vld [vmem:[%s456_s3 + $0x40] sm:$0xff]  ;;  %v33_v14 = vld [vmem:[%s456_s3 + $0x38] sm:$0xff] }
   0x9   :  { %258 = vmatmul.mubr.msk.f32.vlgmr.msra.gmra.mxu0 %vm50_vm1, %v43_v8  ;;  %267 = vmatpush3.msra.mxu1 %v38_v9  ;;  %v32_v15 = vld [vmem:[%s456_s3 + $0x30] sm:$0xff]  ;;  %v31_v16 = vld [vmem:[%s456_s3 + $0x28] sm:$0xff]  ;;  %v30_v17 = vld [vmem:[%s456_s3 + $0x20] sm:$0xff] }
   0xa   :  { %268 = vmatprep.subr.mxu1 %v324_v1  ;;  %292 = vmatprep.mubr.msk.f32.mxu1 %vm325_vm0, %v324_v1  ;;  %v29_v18 = vld [vmem:[%s456_s3 + $0x18] sm:$0xff]  ;;  %v28_v19 = vld [vmem:[%s456_s3 + $0x10] sm:$0xff]  ;;  %v27_v20 = vld [vmem:[%s456_s3 + $0x8] sm:$0xff] }
   0xb   :  { %269 = vmatpush3.msra.mxu1 %v37_v10  ;;  %v26_v21 = vld [vmem:[%s456_s3] sm:$0xff]  ;;  %s326_s3 = smov [#allocation2]  }
   0xc   :  { %270 = vmatprep.subr.mxu1 %v324_v1  ;;  %v223_v22 = vld [vmem:[%s455_s2] ss:$0 sm:$0xff]  ;;  %s215_s11 = sshll.u32 %s326_s3, 4  ;;  %s216_s11 = int_to_ptr.vmem [resolvable:$true] %s215_s11 }
   0xd   :  { %271 = vmatpush3.msra.mxu1 %v36_v11  ;;  %v225_v27 = vld [vmem:[%s457_s4] ss:$0 sm:$0xff]  ;;  %s302_s2 = scalar_lea.vmem %s216_s11, 128  ;;  %p307_p1 = scmp.lt.s32.totalorder %s216_s11, %s216_s11 }
   0xe   :  { %272 = vmatprep.subr.mxu1 %v324_v1  ;;  %p303_p0 = scmp.ne.s32.totalorder %s216_s11, %s302_s2  ;;  %p308_p2 = scmp.lt.s32.totalorder %s302_s2, %s302_s2 }
   0xf   :  { %273 = vmatpush3.msra.mxu1 %v35_v12 }
  0x10   :  { %274 = vmatprep.subr.mxu1 %v324_v1  ;;  %p309_p3 = por %p308_p2, %p307_p1 }
  0x11   :  { %275 = vmatpush3.msra.mxu1 %v34_v13 }
  0x12   :  { %276 = vmatprep.subr.mxu1 %v324_v1  ;;  %p310_p4 = pnand %p309_p3, %p303_p0 }
  0x13   :  { %277 = vmatpush3.msra.mxu1 %v33_v14 }
  0x14   :  { %278 = vmatprep.subr.mxu1 %v324_v1 }
  0x15   :  { %279 = vmatpush3.msra.mxu1 %v32_v15 }
  0x16   :  { %280 = vmatprep.subr.mxu1 %v324_v1 }
  0x17   :  { %281 = vmatpush3.msra.mxu1 %v31_v16 }
  0x18   :  { %282 = vmatprep.subr.mxu1 %v324_v1 }
  0x19   :  { %283 = vmatpush3.msra.mxu1 %v30_v17 }
  0x1a   :  { %284 = vmatprep.subr.mxu1 %v324_v1 }
  0x1b   :  { %285 = vmatpush3.msra.mxu1 %v29_v18 }
  0x1c   :  { %286 = vmatprep.subr.mxu1 %v324_v1 }
  0x1d   :  { %287 = vmatpush3.msra.mxu1 %v28_v19 }
  0x1e   :  { %288 = vmatprep.subr.mxu1 %v324_v1 }
  0x1f   :  { %289 = vmatpush3.msra.mxu1 %v27_v20 }
  0x20   :  { %290 = vmatprep.subr.mxu1 %v324_v1 }
  0x21   :  { %291 = vmatpush3.msra.mxu1 %v26_v21 }
  0xc9   :  { %v120_v23 = vpop.f32.mrf.mxu0 }
  0xca   :  { %v121_v24 = vadd.f32 %v223_v22, %v120_v23 }
  0xcb   :  { %v259_v25 = vpop.f32.mrf.mxu0 }
  0xcc   :  { %v124_v26 = vmax.f32 %v121_v24, 0.0 }
  0xce   :  { %293 = vmatmul.mubr.f32.vlgmr.msra.gmra.mxu1 %v124_v26 }
 0x18e   :  { %v197_v28 = vpop.f32.mrf.mxu1 }
 0x18f   :  { %v198_v29 = vadd.f32 %v225_v27, %v197_v28 }
 0x190   :  { %v294_v30 = vpop.f32.mrf.mxu1 }
 0x191   :  { %v226_v31 = vmul.f32 -1.442695, %v198_v29 }
 0x193   :  { %298 = vpow2.f32 %v226_v31 }
 0x1a0   :  { %v299_v32 = vpop.eup %298 }
 0x1a1   :  { %v204_v33 = vadd.f32 1.0, %v299_v32 }
 0x1a3   :  { %300 = vrcp.f32 %v204_v33 }
 0x1b0   :  { %v301_v34 = vpop.eup %300 }
 0x1b1   :  { %208 = vst.msk [vmem:[#allocation2] sm:$0xff] %vm207_vm2, %v301_v34 }
 0x1b2   :  { %313 = shalt.err (!%p310_p4)
}
 0x1b3   :  { %218 = dma.vmem_to_hbm [thread:$0]  %s216_s11, 128, %s458_s5, [#allocation3]  }
 0x1b4   :  { %322 = dma.done.wait [#allocation3], 128  }
 0x1b5   :  { %323 = vsyncadd [#allocation3], 4294967168 }
 0x1b6   :  { %222 = vsyncpa [#allocation3], 1 }

</bundles_post_ra>
